<compile_context>
chip_gen: v7x
topology: tpu7x:2x2x1
jax: 0.10.0
libtpu: 0.0.40
codegen_flags: <defaults>
</compile_context>

<pallas_src>
import jax
import jax.numpy as jnp
from jax.experimental import pallas as pl
from jax.experimental.pallas import tpu as pltpu


def _conv1x1_kernel(x_ref, w_ref, b_ref, o_ref):
    # x_ref: (Cin, HW)  VMEM   -- one image's channels, spatial on the lane axis
    # w_ref: (Cout*Cin,) SMEM  -- row-major w[co, ci]
    # b_ref: (Cout,)     SMEM
    # o_ref: (Cout, HW)  VMEM
    cin = x_ref.shape[0]
    cout = o_ref.shape[0]

    x = x_ref[...].astype(jnp.float32)          # single dense (Cin, HW) load

    # Fully unrolled VPU channel mix: out[co,:] = sum_ci w[co,ci]*x[ci,:] + b[co]
    for co in range(cout):
        acc = x[0:1, :] * w_ref[co * cin + 0]
        for ci in range(1, cin):
            acc = acc + x[ci:ci + 1, :] * w_ref[co * cin + ci]
        o_ref[co:co + 1, :] = (acc + b_ref[co]).astype(o_ref.dtype)


def conv2d_1x1(x_nchw, weight, bias):
    """1x1 conv (stride 1, no padding), equivalent to nn.Conv2d(Cin, Cout, 1).

    x_nchw: (N, Cin, H, W) float32
    weight: (Cout, Cin, 1, 1) float32
    bias:   (Cout,) float32
    returns (N, Cout, H, W) float32
    """
    n, cin, h, w = x_nchw.shape
    cout = weight.shape[0]
    hw = h * w

    # NCHW is already contiguous as (N, Cin, H*W): reshape is free, no transpose.
    x3 = x_nchw.reshape(n, cin, hw)
    w_flat = weight.reshape(cout * cin)          # row-major (co, ci) scalars
    # NOTE: block last dim == full array dim, so no padding needed even if
    # H*W is not a multiple of 128 (here H*W = 256, fully lane-dense).
    # TODO(synk): for very large H*W, tile the lane axis (blocks >= 512 lanes).

    out3 = pl.pallas_call(
        _conv1x1_kernel,
        out_shape=jax.ShapeDtypeStruct((n, cout, hw), x_nchw.dtype),
        grid=(n,),
        in_specs=[
            # Per-image slab: batch dim squeezed out, (Cin, HW) in the kernel.
            pl.BlockSpec((None, cin, hw), lambda i: (i, 0, 0)),
            # 9 weight scalars + 3 bias scalars straight into SMEM (no VMEM
            # tile padding, no extra DMAs/double buffers).
            pl.BlockSpec(memory_space=pltpu.MemorySpace.SMEM),
            pl.BlockSpec(memory_space=pltpu.MemorySpace.SMEM),
        ],
        out_specs=pl.BlockSpec((None, cout, hw), lambda i: (i, 0, 0)),
        compiler_params=pltpu.CompilerParams(
            dimension_semantics=("parallel",)),
    )(x3, w_flat, bias)

    return out3.reshape(n, cout, h, w)


if __name__ == "__main__":
    key = jax.random.PRNGKey(0)
    k_x, k_b = jax.random.split(key)

    # Shapes consistent with the module: Conv2d(3, 3, 1).
    N, C, H, W = 2, 3, 16, 16
    x = jax.random.normal(k_x, (N, C, H, W), dtype=jnp.float32)

    # Module semantics: weight = ones; bias = default Conv2d init (deterministic here).
    weight = jnp.ones((3, 3, 1, 1), dtype=jnp.float32)
    bound = 1.0 / jnp.sqrt(3.0)  # fan_in = Cin * kH * kW = 3
    bias = jax.random.uniform(k_b, (3,), dtype=jnp.float32,
                              minval=-bound, maxval=bound)

    out = conv2d_1x1(x, weight, bias)
    out = jax.block_until_ready(out)

    # Reference: all-ones 1x1 conv == sum over input channels + per-channel bias.
    ref = jnp.sum(x, axis=1, keepdims=True) + bias.reshape(1, 3, 1, 1)
    assert out.shape == (N, 3, H, W)
    assert jnp.allclose(out, ref, atol=1e-5), "mismatch vs reference"

    print("KERNEL_OK")
</pallas_src>

<mosaic_0001>
module attributes {stable_mosaic.version = 11 : i64} {
  func.func @_conv1x1_kernel(%arg0: i32, %arg1: memref<1x3x256xf32, #tpu.memory_space<vmem>>, %arg2: memref<9xf32, #tpu.memory_space<smem>>, %arg3: memref<3xf32, #tpu.memory_space<smem>>, %arg4: memref<1x3x256xf32, #tpu.memory_space<vmem>>) attributes {dimension_semantics = [#tpu.dimension_semantics<parallel>], iteration_bounds = array<i64: 2>, scalar_prefetch = 0 : i64, scratch_operands = 0 : i64, tpu.core_type = #tpu.core_type<tc>, window_params = [{transform_indices = @transform_0, window_bounds = array<i64: 1, 3, 256>}, {transform_indices = @transform_1, window_bounds = array<i64: 9>}, {transform_indices = @transform_2, window_bounds = array<i64: 3>}, {transform_indices = @transform_3, window_bounds = array<i64: 1, 3, 256>}]} {
    %c0 = arith.constant 0 : index
    %c0_0 = arith.constant 0 : index
    %c0_1 = arith.constant 0 : index
    %0 = vector.load %arg1[%c0, %c0_0, %c0_1] : memref<1x3x256xf32, #tpu.memory_space<vmem>>, vector<1x3x256xf32>
    %1 = vector.shape_cast %0 : vector<1x3x256xf32> to vector<3x256xf32>
    %2 = vector.extract_strided_slice %1 {offsets = [0, 0], sizes = [1, 256], strides = [1, 1]} : vector<3x256xf32> to vector<1x256xf32>
    %c0_2 = arith.constant 0 : index
    %3 = memref.load %arg2[%c0_2] : memref<9xf32, #tpu.memory_space<smem>>
    %4 = vector.broadcast %3 : f32 to vector<1x256xf32>
    %5 = arith.mulf %2, %4 : vector<1x256xf32>
    %6 = vector.extract_strided_slice %1 {offsets = [1, 0], sizes = [1, 256], strides = [1, 1]} : vector<3x256xf32> to vector<1x256xf32>
    %c1 = arith.constant 1 : index
    %7 = memref.load %arg2[%c1] : memref<9xf32, #tpu.memory_space<smem>>
    %8 = vector.broadcast %7 : f32 to vector<1x256xf32>
    %9 = arith.mulf %6, %8 : vector<1x256xf32>
    %10 = arith.addf %5, %9 : vector<1x256xf32>
    %11 = vector.extract_strided_slice %1 {offsets = [2, 0], sizes = [1, 256], strides = [1, 1]} : vector<3x256xf32> to vector<1x256xf32>
    %c2 = arith.constant 2 : index
    %12 = memref.load %arg2[%c2] : memref<9xf32, #tpu.memory_space<smem>>
    %13 = vector.broadcast %12 : f32 to vector<1x256xf32>
    %14 = arith.mulf %11, %13 : vector<1x256xf32>
    %15 = arith.addf %10, %14 : vector<1x256xf32>
    %c0_3 = arith.constant 0 : index
    %16 = memref.load %arg3[%c0_3] : memref<3xf32, #tpu.memory_space<smem>>
    %17 = vector.broadcast %16 : f32 to vector<1x256xf32>
    %18 = arith.addf %15, %17 : vector<1x256xf32>
    %c0_4 = arith.constant 0 : index
    %c0_5 = arith.constant 0 : index
    %c0_6 = arith.constant 0 : index
    %19 = vector.load %arg4[%c0_4, %c0_5, %c0_6] : memref<1x3x256xf32, #tpu.memory_space<vmem>>, vector<1x1x256xf32>
    %20 = vector.shape_cast %19 : vector<1x1x256xf32> to vector<1x256xf32>
    %21 = vector.shape_cast %18 : vector<1x256xf32> to vector<1x1x256xf32>
    tpu.vector_store %arg4[%c0_4, %c0_5, %c0_6], %21 {strides = array<i32>} : memref<1x3x256xf32, #tpu.memory_space<vmem>>, vector<1x1x256xf32>,
    %22 = vector.extract_strided_slice %1 {offsets = [0, 0], sizes = [1, 256], strides = [1, 1]} : vector<3x256xf32> to vector<1x256xf32>
    %c3 = arith.constant 3 : index
    %23 = memref.load %arg2[%c3] : memref<9xf32, #tpu.memory_space<smem>>
    %24 = vector.broadcast %23 : f32 to vector<1x256xf32>
    %25 = arith.mulf %22, %24 : vector<1x256xf32>
    %26 = vector.extract_strided_slice %1 {offsets = [1, 0], sizes = [1, 256], strides = [1, 1]} : vector<3x256xf32> to vector<1x256xf32>
    %c4 = arith.constant 4 : index
    %27 = memref.load %arg2[%c4] : memref<9xf32, #tpu.memory_space<smem>>
    %28 = vector.broadcast %27 : f32 to vector<1x256xf32>
    %29 = arith.mulf %26, %28 : vector<1x256xf32>
    %30 = arith.addf %25, %29 : vector<1x256xf32>
    %31 = vector.extract_strided_slice %1 {offsets = [2, 0], sizes = [1, 256], strides = [1, 1]} : vector<3x256xf32> to vector<1x256xf32>
    %c5 = arith.constant 5 : index
    %32 = memref.load %arg2[%c5] : memref<9xf32, #tpu.memory_space<smem>>
    %33 = vector.broadcast %32 : f32 to vector<1x256xf32>
    %34 = arith.mulf %31, %33 : vector<1x256xf32>
    %35 = arith.addf %30, %34 : vector<1x256xf32>
    %c1_7 = arith.constant 1 : index
    %36 = memref.load %arg3[%c1_7] : memref<3xf32, #tpu.memory_space<smem>>
    %37 = vector.broadcast %36 : f32 to vector<1x256xf32>
    %38 = arith.addf %35, %37 : vector<1x256xf32>
    %c0_8 = arith.constant 0 : index
    %c1_9 = arith.constant 1 : index
    %c0_10 = arith.constant 0 : index
    %39 = vector.load %arg4[%c0_8, %c1_9, %c0_10] : memref<1x3x256xf32, #tpu.memory_space<vmem>>, vector<1x1x256xf32>
    %40 = vector.shape_cast %39 : vector<1x1x256xf32> to vector<1x256xf32>
    %41 = vector.shape_cast %38 : vector<1x256xf32> to vector<1x1x256xf32>
    tpu.vector_store %arg4[%c0_8, %c1_9, %c0_10], %41 {strides = array<i32>} : memref<1x3x256xf32, #tpu.memory_space<vmem>>, vector<1x1x256xf32>,
    %42 = vector.extract_strided_slice %1 {offsets = [0, 0], sizes = [1, 256], strides = [1, 1]} : vector<3x256xf32> to vector<1x256xf32>
    %c6 = arith.constant 6 : index
    %43 = memref.load %arg2[%c6] : memref<9xf32, #tpu.memory_space<smem>>
    %44 = vector.broadcast %43 : f32 to vector<1x256xf32>
    %45 = arith.mulf %42, %44 : vector<1x256xf32>
    %46 = vector.extract_strided_slice %1 {offsets = [1, 0], sizes = [1, 256], strides = [1, 1]} : vector<3x256xf32> to vector<1x256xf32>
    %c7 = arith.constant 7 : index
    %47 = memref.load %arg2[%c7] : memref<9xf32, #tpu.memory_space<smem>>
    %48 = vector.broadcast %47 : f32 to vector<1x256xf32>
    %49 = arith.mulf %46, %48 : vector<1x256xf32>
    %50 = arith.addf %45, %49 : vector<1x256xf32>
    %51 = vector.extract_strided_slice %1 {offsets = [2, 0], sizes = [1, 256], strides = [1, 1]} : vector<3x256xf32> to vector<1x256xf32>
    %c8 = arith.constant 8 : index
    %52 = memref.load %arg2[%c8] : memref<9xf32, #tpu.memory_space<smem>>
    %53 = vector.broadcast %52 : f32 to vector<1x256xf32>
    %54 = arith.mulf %51, %53 : vector<1x256xf32>
    %55 = arith.addf %50, %54 : vector<1x256xf32>
    %c2_11 = arith.constant 2 : index
    %56 = memref.load %arg3[%c2_11] : memref<3xf32, #tpu.memory_space<smem>>
    %57 = vector.broadcast %56 : f32 to vector<1x256xf32>
    %58 = arith.addf %55, %57 : vector<1x256xf32>
    %c0_12 = arith.constant 0 : index
    %c2_13 = arith.constant 2 : index
    %c0_14 = arith.constant 0 : index
    %59 = vector.load %arg4[%c0_12, %c2_13, %c0_14] : memref<1x3x256xf32, #tpu.memory_space<vmem>>, vector<1x1x256xf32>
    %60 = vector.shape_cast %59 : vector<1x1x256xf32> to vector<1x256xf32>
    %61 = vector.shape_cast %58 : vector<1x256xf32> to vector<1x1x256xf32>
    tpu.vector_store %arg4[%c0_12, %c2_13, %c0_14], %61 {strides = array<i32>} : memref<1x3x256xf32, #tpu.memory_space<vmem>>, vector<1x1x256xf32>,
    return
  }
  func.func @transform_0(%arg0: i32) -> (i32, i32, i32) {
    %c0_i32 = arith.constant 0 : i32
    %c0_i32_0 = arith.constant 0 : i32
    %c0_i32_1 = arith.constant 0 : i32
    return %arg0, %c0_i32, %c0_i32_0 : i32, i32, i32
  }
  func.func @transform_1(%arg0: i32) -> i32 {
    %c0_i32 = arith.constant 0 : i32
    %c0_i32_0 = arith.constant 0 : i32
    return %c0_i32 : i32
  }
  func.func @transform_2(%arg0: i32) -> i32 {
    %c0_i32 = arith.constant 0 : i32
    %c0_i32_0 = arith.constant 0 : i32
    return %c0_i32 : i32
  }
  func.func @transform_3(%arg0: i32) -> (i32, i32, i32) {
    %c0_i32 = arith.constant 0 : i32
    %c0_i32_0 = arith.constant 0 : i32
    %c0_i32_1 = arith.constant 0 : i32
    return %arg0, %c0_i32, %c0_i32_0 : i32, i32, i32
  }
}

</mosaic_0001>

<bundles_post_ra>
// kernel: tpu_custom_call.1
= control target key start
LH: loop header
LB: loop body
LE: loop exit
PB: predicated region body
PF: predicated region fallthrough
CT: control target
= control target key end

     0   :  { %8 = vsyncpa [#allocation3], 0  ;;  %s605_s0 = inlined_call_operand.vmem [shape: f32[2,3,256], index: 0, kind: input, shape index: {}]   ;;  %s606_s1 = inlined_call_operand.vmem [shape: f32[9], index: 1, kind: input, shape index: {}]   ;;  %s607_s2 = inlined_call_operand.vmem [shape: f32[3], index: 2, kind: input, shape index: {}]   ;;  %s608_s3 = inlined_call_operand.vmem [shape: f32[2,3,256], index: 3, kind: output, shape index: {}]  }
   0x1   :  { %9 = vsyncpa [#allocation5], 0  ;;  %s533_s12 = smov 0  }
   0x2 LB: > { %s539_s13 = sadd.s32 4294967295, %s508_s12   ;;  %p401_p0 = scmp.ge.s32.totalorder %s508_s12, 1  ;;  %s508_s12 = sphi %s533_s12, %s15_s12  }
   0x3   : > { %p114_p1 = scmp.lt.s32.totalorder %s508_s12, 3  ;;  %s127_s16 = sshll.u32 %s606_s1, 4  ;;  %s128_s16 = int_to_ptr.vmem [resolvable:$true] %s127_s16 }
   0x4   : > { %p609_p3 = scmp.eq.s32.totalorder %s539_s13, 0  ;;  %s138_s20 = sshll.u32 %s607_s2, 4  ;;  %s139_s20 = int_to_ptr.vmem [resolvable:$true] %s138_s20 }
   0x5   : > { %p546_p2 = pnand %p401_p0, %p114_p1  ;;  %s464_s22 = scalar_lea.vmem %s128_s16, 16 }
   0x6   : > { %p465_p6 = scmp.ne.s32.totalorder %s128_s16, %s464_s22  ;;  %p472_p10 = scmp.lt.s32.totalorder %s128_s16, %s128_s16 }
   0x7   : > { %s611_s17 = scalar_select %p546_p2, 1, 0 }
   0x8   : > { %p442_p4 = pneg %p546_p2  ;;  %p473_p11 = scmp.lt.s32.totalorder %s464_s22, %s464_s22 }
   0xa   : > { %p558_p5 = pnand %p609_p3, %p442_p4  ;;  %p474_p12 = por %p473_p11, %p472_p10 }
   0xc   : > { %p466_p7 = pneg %p558_p5 }
   0xe   : > { %p467_p8 = pnand %p466_p7, %p465_p6 }
  0x10   : > { %p468_p9 = pneg %p467_p8 }
  0x12   : > { %p475_p13 = pnand %p474_p12, %p468_p9 }
  0x14   : > { %478 = shalt.err (!%p475_p13)
}
  0x15   : > { %s510_s23 = smov [#allocation2]   ;;  %s479_s24 = scalar_lea.vmem %s139_s20, 16 }
  0x16   : > { %445 = dma.vmem_to_smem (!%p558_p5), %s128_s16, 16, %s510_s23, [#allocation3]  }
  0x17   : > { %p480_p0 = scmp.ne.s32.totalorder %s139_s20, %s479_s24  ;;  %p487_p3 = scmp.lt.s32.totalorder %s139_s20, %s139_s20 }
  0x18   : > { %p488_p2 = scmp.lt.s32.totalorder %s479_s24, %s479_s24 }
  0x19   : > { %p482_p1 = pnand %p480_p0, %p466_p7 }
  0x1a   : > { %p489_p6 = por %p488_p2, %p487_p3 }
  0x1b   : > { %p483_p4 = pneg %p482_p1 }
  0x1d   : > { %p490_p8 = pnand %p489_p6, %p483_p4 }
  0x1f   : > { %493 = shalt.err (!%p490_p8)
}
  0x20   : > { %s511_s25 = smov [#allocation4]   ;;  %p613_p9 = scmp.ne.s32.totalorder %s611_s17, 0 }
  0x21   : > { %448 = dma.vmem_to_smem (!%p558_p5), %s139_s20, 16, %s511_s25, [#allocation5]  }
  0x22   : > { %159 = sbr.rel (%p613_p9) target bundleno = 76 (0x4c), region = 32  ;;  %p614_p10 = scmp.eq.s32.totalorder (!%p613_p9), %s539_s13, 0 }
  0x29   : > { %499 = dma.done.wait (%p614_p10), [#allocation3], 16   ;;  %p615_p11 = pmov %p614_p10 }
  0x2a   : > { %p616_p7 = pmov %p614_p10 }
  0x2b   : > { %501 = vsyncadd (%p615_p11), [#allocation3], 4294967280 }
  0x2c   : > { %503 = dma.done.wait (%p616_p7), [#allocation5], 16   ;;  %p617_p2 = pmov %p616_p7 }
  0x2e   : > { %505 = vsyncadd (%p617_p2), [#allocation5], 4294967280 }
  0x2f   : > { %169 = sfence }
  0x30   : > { %p188_p3 = scmp.lt.s32.totalorder %s539_s13, 1  ;;  %s199_s26 = sld [smem:[#allocation2]]  ;;  %v225_v0 = vlaneseq  ;;  %v512_v1 = vmov 1966171168  }
  0x31   : > { %s412_s27 = sld [smem:[#allocation2 + $0x1]]  ;;  %s414_s28 = sld [smem:[#allocation2 + $0x2]]  ;;  %v223_v2 = vunpack.c.l.s4 %v512_v1 }
  0x32   : > { %s619_s13 = smov (!%p188_p3, %s539_s13), 1  ;;  %s582_s29 = sld [smem:[#allocation4]]  ;;  %v226_v7 = vshrl.u32 %v225_v0, 7  ;;  %vm239_vm0 = vcmp.lt.s32.totalorder %v225_v0, 256 }
  0x33   : > { %s416_s30 = sld [smem:[#allocation2 + $0x3]]  ;;  %s432_s4 = sshll.u32 %s619_s13, 3  ;;  %v224_v11 = vunpack.c.0.s8 %v223_v2 }
  0x34   : > { %s417_s5 = sld [smem:[#allocation2 + $0x4]]  ;;  %s192_s8 = scalar_lea.vmem %s605_s0, %s432_s4 }
  0x35   : > { %v198_v3 = vld [vmem:[%s192_s8] sm:$0x77]  ;;  %s419_s9 = sld [smem:[#allocation2 + $0x5]]  ;;  %s423_s10 = sld [smem:[#allocation2 + $0x6]]  ;;  %v227_v20 = vsub.s32 %v224_v11, %v226_v7 }
  0x36   : > { %v200_v4 = vstv %s199_s26  ;;  %s424_s11 = sld [smem:[#allocation2 + $0x7]]  ;;  %s590_s14 = sld [smem:[#allocation4 + $0x1]] }
  0x37   : > { %v203_v5 = vstv %s412_s27  ;;  %v211_v6 = vstv %s414_s28  ;;  %v201_v8 = vmul.f32 %v200_v4, %v198_v3  ;;  %s426_s15 = sld [smem:[#allocation2 + $0x8]]  ;;  %s592_s16 = sld [smem:[#allocation4 + $0x2]] }
  0x38   : > { %v204_v9 = vmul.f32 %v203_v5, %v198_v3  ;;  %v212_v10 = vmul.f32 %v211_v6, %v198_v3  ;;  %v219_v19 = vstv %s582_s29  ;;  %s197_s19 = scalar_lea.vmem %s608_s3, %s432_s4 }
  0x39   : > { %v243_v12 = vstv %s416_s30 }
  0x3a   : > { %v413_v13 = vrot.slane %v204_v9, 9  ;;  %v415_v14 = vrot.slane %v212_v10, 10  ;;  %v246_v15 = vstv %s417_s5  ;;  %v244_v16 = vmul.f32 %v243_v12, %v198_v3 }
  0x3b   : > { %v247_v17 = vmul.f32 %v246_v15, %v198_v3  ;;  %v254_v21 = vstv %s419_s9  ;;  %v283_v24 = vstv %s423_s10 }
  0x3c   : > { %v209_v18 = vadd.f32 %v413_v13, %v201_v8  ;;  %v255_v23 = vmul.f32 %v254_v21, %v198_v3  ;;  %v286_v25 = vstv %s424_s11  ;;  %v284_v27 = vmul.f32 %v283_v24, %v198_v3 }
  0x3d   : > { %v418_v22 = vrot.slane %v247_v17, 9  ;;  %v287_v28 = vmul.f32 %v286_v25, %v198_v3  ;;  %v294_v29 = vstv %s426_s15  ;;  %v262_v34 = vstv %s590_s14 }
  0x3e   : > { %v217_v26 = vadd.f32 %v415_v14, %v209_v18  ;;  %v420_v31 = vrot.slane %v255_v23, 10  ;;  %v295_v32 = vmul.f32 %v294_v29, %v198_v3  ;;  %v302_v41 = vstv %s592_s16 }
  0x3f   : > { %v252_v30 = vadd.f32 %v418_v22, %v244_v16  ;;  %v425_v35 = vrot.slane %v287_v28, 9 }
  0x40   : > { %v220_v33 = vadd.f32 %v219_v19, %v217_v26  ;;  %v427_v37 = vrot.slane %v295_v32, 10 }
  0x41   : > { %v260_v36 = vadd.f32 %v420_v31, %v252_v30  ;;  %v292_v39 = vadd.f32 %v425_v35, %v284_v27 }
  0x42   : > { %v228_v38 = vrot.slane %v220_v33, %v227_v20 }
  0x43   : > { %v263_v40 = vadd.f32 %v262_v34, %v260_v36  ;;  %v300_v43 = vadd.f32 %v427_v37, %v292_v39 }
  0x44   : > { %v235_v42 = vrot.slane %v228_v38, %v227_v20 }
  0x45   : > { %v271_v44 = vrot.slane %v263_v40, %v227_v20  ;;  %v303_v45 = vadd.f32 %v302_v41, %v300_v43 }
  0x46   : > { %241 = vst.msk [vmem:[%s197_s19] ss:$4 sm:$0x3] %vm239_vm0, %v235_v42 }
  0x47   : > { %v278_v46 = vrot.slane %v271_v44, %v227_v20  ;;  %v311_v47 = vrot.slane %v303_v45, %v227_v20 }
  0x49   : > { %422 = vst.msk [vmem:[%s197_s19 + $0x1] ss:$4 sm:$0x3] %vm239_vm0, %v278_v46  ;;  %v318_v48 = vrot.slane %v311_v47, %v227_v20 }
  0x4b   : > { %429 = vst.msk [vmem:[%s197_s19 + $0x2] ss:$4 sm:$0x3] %vm239_vm0, %v318_v48 }
  0x4c PF: > { %s15_s12 = sadd.s32 1, %s508_s12  }
  0x4d   : > { %p12_p5 = scmp.ge.s32.totalorder %s15_s12, 4  }
  0x4f   :  { %14 = sbr.rel (!%p12_p5) target bundleno = 2 (0x2), region = 73 }
  0x56   :  { %343 = vsyncpa [#allocation3], 1 }
  0x57   :  { %345 = vsyncpa [#allocation3 + $0x1], 1 }
  0x58   :  { %346 = vsyncpa [#allocation5], 1 }

</bundles_post_ra>
